<compile_context>
chip_gen: v5e
topology: v5e:2x2
jax: 0.10.0
libtpu: 0.0.40
codegen_flags: <defaults>
</compile_context>

<pallas_src>
import math

import jax
import jax.numpy as jnp
from jax.experimental import pallas as pl
from jax.experimental.pallas import tpu as pltpu


# ------------------------------ in-kernel math ------------------------------

_SQRT1_2 = 0.7071067811865476


def _erf(x):
    # Abramowitz & Stegun 7.1.26 polynomial erf (|err| < 1.5e-7 for the exact
    # formula; the approx EUP reciprocal adds ~1e-4 relative error in t).
    p = 0.3275911
    a1, a2, a3, a4, a5 = (0.254829592, -0.284496736, 1.421413741,
                          -1.453152027, 1.061405429)
    sgn = jnp.where(x < 0.0, -1.0, 1.0)
    ax = jnp.abs(x)
    # f32 divide would be VALU (reciprocal + Newton); approx recip is EUP.
    t = pl.reciprocal(1.0 + p * ax, approx=True)
    poly = ((((a5 * t + a4) * t + a3) * t + a2) * t + a1) * t
    return sgn * (1.0 - poly * jnp.exp(-ax * ax))


def _gelu(x):
    # erf-based GELU, matching PyTorch nn.GELU() default (tolerance ~1e-4
    # absolute due to the approx reciprocal -- fine for inference).
    return 0.5 * x * (1.0 + _erf(x * _SQRT1_2))


# ------------------------------ Pallas kernels ------------------------------

def _mask_downscale_kernel(x_ref, wA_ref, wG_ref, p1_ref,
                           w2_ref, p2_ref, w3_ref, b3_ref, o_ref):
    """Fused mask_downscaling for one (batch-block, pixel-tile) grid cell.

    x_ref : (1, 16, T)   im2col'd 4x4 patches, rows ordered (p, q, ki, kj)
    wA_ref: (4*c1, 16)   conv1 weight as a block-diagonal matrix (MXU)
    wG_ref: (4*c1, 4*c1) block-diagonal group-averaging matrix (grouped LN)
    p1_ref: (4*c1, 3)    columns [bias, ln_gamma, ln_beta] (tiled per group)
    w2_ref: (C, 4*c1)    conv2 weight, columns ordered (p, q, c1)
    p2_ref: (C, 3)       columns [bias, ln_gamma, ln_beta]
    w3_ref: (E, C)       conv3 (1x1) weight
    b3_ref: (E, 1)       conv3 bias
    o_ref : (1, E, T)    dense embedding tile (channels on sublanes -> NCHW)
    """
    x = x_ref[0]                                              # (16, T)

    # conv1 (k=2, s=2, Cin=1) as one block-diagonal matmul on the MXU.
    z1 = jnp.dot(wA_ref[...], x, preferred_element_type=jnp.float32)
    z1 = z1 + p1_ref[:, 0:1]                                  # (4*c1, T)

    # Grouped LayerNorm2d (per (p,q) sub-pixel over its c1 channels):
    # group mean / variance via the constant block-diag averaging matmul,
    # elementwise tail + GELU once on the FULL (4*c1, T) tensor.
    wG = wG_ref[...]
    u = jnp.dot(wG, z1, preferred_element_type=jnp.float32)
    d = z1 - u
    var = jnp.dot(wG, d * d, preferred_element_type=jnp.float32)
    z1 = d * jax.lax.rsqrt(var + 1e-6) * p1_ref[:, 1:2] + p1_ref[:, 2:3]
    z1 = _gelu(z1)

    # conv2 (k=2, s=2, folded into the im2col rows) + LayerNorm2d + GELU (MXU)
    z2 = jnp.dot(w2_ref[...], z1, preferred_element_type=jnp.float32)
    z2 = z2 + p2_ref[:, 0:1]
    u2 = jnp.mean(z2, axis=0, keepdims=True)
    d2 = z2 - u2
    v2 = jnp.mean(d2 * d2, axis=0, keepdims=True)
    z2 = d2 * jax.lax.rsqrt(v2 + 1e-6) * p2_ref[:, 1:2] + p2_ref[:, 2:3]
    z2 = _gelu(z2)

    # conv3 (1x1)  (MXU) -> already (channels, pixels); cast at the store
    # (set dense_dtype=bfloat16 to halve the HBM writeback if downstream
    #  accepts it -- the kernel is HBM-write bound at real SAM shapes).
    z3 = jnp.dot(w3_ref[...], z2, preferred_element_type=jnp.float32)
    o_ref[0] = (z3 + b3_ref[...]).astype(o_ref.dtype)


def _sparse_embed_kernel(coords_ref, onehot_ref, gmat_ref, off_ref, emb_ref, o_ref):
    """Random-Fourier positional encoding + label-dependent embedding adds.

    coords_ref: (R, 2)    raw pixel coords (rows padded to a multiple of 8)
    onehot_ref: (R, 5)    one_hot(label + 1); column 0 == "not a point" (-1)
    gmat_ref:   (2, C/2)  gaussian matrix pre-scaled by the folded affine
    off_ref:    (1, C/2)  folded affine offset
    emb_ref:    (5, C)    rows: [not_a_point, pe0, pe1, pe2, pe3]
    o_ref:      (R, C)

    NOTE: arrays here are tiny with last dims 2/5/C and are passed as
    full-array blocks (exempt from the (8,128) block rule); adding a grid /
    block_shape to this call would require re-padding to the tiling rules.
    """
    c = coords_ref[...]
    g = gmat_ref[...]
    p = c[:, 0:1] * g[0:1, :] + c[:, 1:2] * g[1:2, :] + off_ref[...]
    pe = jnp.concatenate([jnp.sin(p), jnp.cos(p)], axis=-1)          # (R, C)
    sel = onehot_ref[...]
    keep = 1.0 - sel[:, 0:1]                  # zero the PE where label == -1
    emb = emb_ref[...]
    out = pe * keep
    # Label adds as 5 VPU broadcast-FMAs; a K=5 MXU matmul costs more in issue
    # latency than the work itself at these sizes.
    for k in range(5):
        out = out + sel[:, k:k + 1] * emb[k:k + 1, :]
    o_ref[...] = out


# --------------------------------- wrapper ----------------------------------

def _pick_lane_tile(L, nb, cap=1024, min_steps=4):
    """Pixel-axis (lane) tile width.

    * lane-dense: a multiple of 128 (or the full extent) -> unmasked vst
    * <= cap (1024): at real SAM shapes (B=1, P=4096) this leaves >= 4 grid
      steps so the auto-pipeline hides the output writeback (tile=2048 would
      give one step per TensorCore on v7x's 2-TC chip = fully exposed DMA);
      it also keeps per-block VMEM a few MiB, safe for v7x's 64 MiB physical
      (32 MiB scoped) VMEM -- do not raise the cap beyond ~4096.
    * never below 512 when tiling (per-step overhead ~0.35 us).
    """
    if L <= cap:
        return L
    cands = [t for t in range(512, cap + 1, 128) if L % t == 0]
    if not cands:
        # No lane-aligned divisor: use a ragged trailing block. Pallas masks
        # the out-of-bounds part of the final store and every output column
        # depends only on its own input column, so padding lanes cannot
        # contaminate valid results.
        return cap
    for t in sorted(cands, reverse=True):
        if nb * ((L + t - 1) // t) >= min_steps:
            return t
    return cands[0]        # smallest divisor >= 512: maximizes pipeline depth


class PromptEncoderPallas:
    def __init__(self, embed_dim, image_embedding_size, input_image_size,
                 mask_in_chans, key, dense_dtype=jnp.float32):
        self.embed_dim = embed_dim
        self.image_embedding_size = image_embedding_size
        self.input_image_size = input_image_size
        self.mask_in_chans = mask_in_chans
        self.dense_dtype = dense_dtype      # bf16 halves the HBM writeback
        c1 = mask_in_chans // 4

        ks = jax.random.split(key, 13)
        f32 = jnp.float32
        # PositionEmbeddingRandom(embed_dim // 2): gaussian matrix (2, C/2)
        self.gaussian = jax.random.normal(ks[0], (2, embed_dim // 2), f32)
        # [not_a_point_embed, point_embeddings[0..3]]  (each nn.Embedding(1, C))
        self.emb_table = jax.random.normal(ks[1], (5, embed_dim), f32)
        self.no_mask_embed = jax.random.normal(ks[2], (1, embed_dim), f32)
        # mask_downscaling params (PyTorch conv weight layout: (Cout, Cin, kh, kw))
        self.w1 = 0.1 * jax.random.normal(ks[3], (c1, 1, 2, 2), f32)
        self.b1 = 0.1 * jax.random.normal(ks[4], (c1,), f32)
        self.ln1_g = 1.0 + 0.1 * jax.random.normal(ks[5], (c1,), f32)
        self.ln1_b = 0.1 * jax.random.normal(ks[6], (c1,), f32)
        self.w2 = 0.1 * jax.random.normal(ks[7], (mask_in_chans, c1, 2, 2), f32)
        self.b2 = 0.1 * jax.random.normal(ks[8], (mask_in_chans,), f32)
        self.ln2_g = 1.0 + 0.1 * jax.random.normal(ks[9], (mask_in_chans,), f32)
        self.ln2_b = 0.1 * jax.random.normal(ks[10], (mask_in_chans,), f32)
        self.w3 = 0.1 * jax.random.normal(ks[11], (embed_dim, mask_in_chans, 1, 1), f32)
        self.b3 = 0.1 * jax.random.normal(ks[12], (embed_dim,), f32)

        # ---- kernel-layout parameters (channels on sublanes) ----
        w1_flat = self.w1.reshape(c1, 4)                       # (c1, (ki,kj))
        # conv1 as a block-diagonal (4*c1, 16) matrix: block pq maps the 4
        # taps of sub-pixel pq to its c1 output channels (rows ordered (pq,c)).
        self.wA_k = jnp.kron(jnp.eye(4, dtype=f32), w1_flat)          # (4c1,16)
        # Block-diagonal group-averaging matrix for the grouped LayerNorm2d.
        self.wG_k = jnp.kron(jnp.eye(4, dtype=f32),
                             jnp.full((c1, c1), 1.0 / c1, f32))       # (4c1,4c1)
        self.p1_k = jnp.stack([jnp.tile(self.b1, 4),
                               jnp.tile(self.ln1_g, 4),
                               jnp.tile(self.ln1_b, 4)], axis=1)      # (4c1, 3)
        # conv2: (Cout, (kh=p, kw=q, cin=c1)) -> matches z1 row ordering (pq,c)
        self.w2_k = jnp.transpose(self.w2, (0, 2, 3, 1)).reshape(mask_in_chans, 4 * c1)
        self.p2_k = jnp.stack([self.b2, self.ln2_g, self.ln2_b], axis=1)  # (C, 3)
        self.w3_k = self.w3.reshape(embed_dim, mask_in_chans)        # (E, C)
        self.b3_k = self.b3.reshape(embed_dim, 1)

        # ---- fold the PE affine (+0.5, /size, *2-1, *2pi) into the matrix ----
        H_in, W_in = input_image_size
        two_pi = 2.0 * math.pi
        scale = jnp.array([[2.0 * two_pi / W_in], [2.0 * two_pi / H_in]], f32)
        self.g_scaled = self.gaussian * scale                        # (2, C/2)
        self.pe_offset = (two_pi * (1.0 / W_in - 1.0) * self.gaussian[0:1, :]
                          + two_pi * (1.0 / H_in - 1.0) * self.gaussian[1:2, :])

    # ---- sparse (points + boxes) path ----
    def _embed_sparse(self, points, boxes):
        coords_list, labels_list = [], []
        if points is not None:
            pt_coords, pt_labels = points
            B = pt_coords.shape[0]
            coords_list.append(pt_coords.astype(jnp.float32))
            labels_list.append(pt_labels.astype(jnp.int32))
            if boxes is None:                     # pad=True branch
                coords_list.append(jnp.zeros((B, 1, 2), jnp.float32))
                labels_list.append(-jnp.ones((B, 1), jnp.int32))
        if boxes is not None:                     # corners == points w/ labels 2,3
            B = boxes.shape[0]
            coords_list.append(boxes.reshape(B, 2, 2).astype(jnp.float32))
            labels_list.append(jnp.tile(jnp.array([[2, 3]], jnp.int32), (B, 1)))

        all_coords = jnp.concatenate(coords_list, axis=1)
        all_labels = jnp.concatenate(labels_list, axis=1)
        B, N = all_labels.shape
        R = B * N
        Rp = max(8, ((R + 7) // 8) * 8)           # sublane-dense stores
        flat_coords = all_coords.reshape(R, 2)
        onehot = jax.nn.one_hot(all_labels.reshape(R) + 1, 5, dtype=jnp.float32)
        if Rp != R:
            flat_coords = jnp.pad(flat_coords, ((0, Rp - R), (0, 0)))
            onehot = jnp.pad(onehot, ((0, Rp - R), (0, 0)))

        sparse = pl.pallas_call(
            _sparse_embed_kernel,
            out_shape=jax.ShapeDtypeStruct((Rp, self.embed_dim), jnp.float32),
        )(flat_coords, onehot, self.g_scaled, self.pe_offset, self.emb_table)
        return sparse[:R].reshape(B, N, self.embed_dim)

    # ---- dense (mask) path: single fused, tiled, pipelined kernel ----
    def _embed_masks(self, masks):
        B, Cin, H, W = masks.shape                # NCHW, Cin == 1
        assert Cin == 1 and H % 4 == 0 and W % 4 == 0
        E = self.embed_dim
        Ho, Wo = H // 4, W // 4
        P = Ho * Wo

        # Single fused im2col transpose over the (small) input mask. The patch
        # row index is ordered (p, q, ki, kj): source pixel
        # (4*oh + 2*p + ki, 4*ow + 2*q + kj). Kept in the wrapper as ONE XLA
        # pass: the strided lane extraction has no clean in-kernel lowering.
        x7 = masks.astype(jnp.float32).reshape(B, Ho, 2, 2, Wo, 2, 2)
        if P >= 512:
            # Per-batch layout: output (B, E, P) is already NCHW after a free
            # reshape (no trailing transpose on the large output).
            x = jnp.transpose(x7, (0, 2, 5, 3, 6, 1, 4)).reshape(B, 16, P)
            nb, L = B, P
        else:
            # Small config: fold batch into the lane axis so the output store
            # is >=128 lanes wide (unmasked vst); the tiny output transpose
            # back to NCHW is negligible at these sizes.
            x = jnp.transpose(x7, (2, 5, 3, 6, 0, 1, 4)).reshape(1, 16, B * P)
            nb, L = 1, B * P

        tile = _pick_lane_tile(L, nb)
        grid = (nb, pl.cdiv(L, tile))

        weights = (self.wA_k, self.wG_k, self.p1_k,
                   self.w2_k, self.p2_k, self.w3_k, self.b3_k)
        in_specs = ([pl.BlockSpec((1, 16, tile), lambda b, t: (b, 0, t))]
                    + [pl.BlockSpec(w.shape, lambda b, t: (0, 0)) for w in weights])
        out_specs = pl.BlockSpec((1, E, tile), lambda b, t: (b, 0, t))

        out = pl.pallas_call(
            _mask_downscale_kernel,
            out_shape=jax.ShapeDtypeStruct((nb, E, L), self.dense_dtype),
            grid=grid,
            in_specs=in_specs,
            out_specs=out_specs,
            compiler_params=pltpu.CompilerParams(
                dimension_semantics=("parallel", "parallel"),
                # ~10 MiB used at tile=1024, E=256: safe within 32 MiB scoped
                # VMEM on v7x (64 MiB physical) as well as v5e/v6e.
                vmem_limit_bytes=32 * 1024 * 1024),
        )(x, *weights)

        if P >= 512:
            return out.reshape(B, E, Ho, Wo)      # free reshape, already NCHW
        out = out.reshape(E, B, Ho, Wo)
        return jnp.transpose(out, (1, 0, 2, 3))   # tiny (small-P path only)

    def __call__(self, points, boxes, masks):
        # batch size (mirrors _get_batch_size)
        if points is not None:
            bs = points[0].shape[0]
        elif boxes is not None:
            bs = boxes.shape[0]
        elif masks is not None:
            bs = masks.shape[0]
        else:
            bs = 1

        if points is not None or boxes is not None:
            sparse = self._embed_sparse(points, boxes)
        else:
            sparse = jnp.zeros((bs, 0, self.embed_dim), jnp.float32)

        if masks is not None:
            dense = self._embed_masks(masks)
        else:
            eh, ew = self.image_embedding_size
            dense = jnp.broadcast_to(
                self.no_mask_embed.reshape(1, self.embed_dim, 1, 1),
                (bs, self.embed_dim, eh, ew)).astype(self.dense_dtype)
        return sparse, dense


# ----------------------------------- main ------------------------------------

if __name__ == "__main__":
    key = jax.random.PRNGKey(0)
    k_param, k_pts, k_box, k_mask = jax.random.split(key, 4)

    embed_dim = 32
    image_embedding_size = (8, 8)
    input_image_size = (32, 32)
    mask_in_chans = 16

    enc = PromptEncoderPallas(embed_dim, image_embedding_size,
                              input_image_size, mask_in_chans, k_param)

    B, Np = 2, 3
    coords = jax.random.uniform(k_pts, (B, Np, 2), jnp.float32,
                                minval=0.0, maxval=31.0)
    labels = jnp.array([[0, 1, -1], [1, 0, 2]], dtype=jnp.int32)
    boxes = jax.random.uniform(k_box, (B, 4), jnp.float32,
                               minval=0.0, maxval=31.0)
    masks = jax.random.normal(
        k_mask, (B, 1, 4 * image_embedding_size[0], 4 * image_embedding_size[1]),
        jnp.float32)

    sparse, dense = enc((coords, labels), boxes, masks)
    jax.block_until_ready((sparse, dense))

    assert sparse.shape == (B, Np + 2, embed_dim), sparse.shape
    assert dense.shape == (B, embed_dim,
                           image_embedding_size[0], image_embedding_size[1]), dense.shape
    assert bool(jnp.isfinite(sparse).all()) and bool(jnp.isfinite(dense).all())
    print("KERNEL_OK")
</pallas_src>

<mosaic_0001>
module attributes {stable_mosaic.version = 11 : i64} {
  func.func @_sparse_embed_kernel(%arg0: memref<16x2xf32, #tpu.memory_space<vmem>>, %arg1: memref<16x5xf32, #tpu.memory_space<vmem>>, %arg2: memref<2x16xf32, #tpu.memory_space<vmem>>, %arg3: memref<1x16xf32, #tpu.memory_space<vmem>>, %arg4: memref<5x32xf32, #tpu.memory_space<vmem>>, %arg5: memref<16x32xf32, #tpu.memory_space<vmem>>) attributes {dimension_semantics = [], scalar_prefetch = 0 : i64, scratch_operands = 0 : i64, tpu.core_type = #tpu.core_type<tc>} {
    %c0 = arith.constant 0 : index
    %c0_0 = arith.constant 0 : index
    %0 = vector.load %arg0[%c0, %c0_0] : memref<16x2xf32, #tpu.memory_space<vmem>>, vector<16x2xf32>
    %c0_1 = arith.constant 0 : index
    %c0_2 = arith.constant 0 : index
    %1 = vector.load %arg2[%c0_1, %c0_2] : memref<2x16xf32, #tpu.memory_space<vmem>>, vector<2x16xf32>
    %2 = vector.extract_strided_slice %0 {offsets = [0, 0], sizes = [16, 1], strides = [1, 1]} : vector<16x2xf32> to vector<16x1xf32>
    %3 = vector.extract_strided_slice %1 {offsets = [0, 0], sizes = [1, 16], strides = [1, 1]} : vector<2x16xf32> to vector<1x16xf32>
    %4 = vector.broadcast %2 : vector<16x1xf32> to vector<16x16xf32>
    %5 = vector.broadcast %3 : vector<1x16xf32> to vector<16x16xf32>
    %6 = arith.mulf %4, %5 : vector<16x16xf32>
    %7 = vector.extract_strided_slice %0 {offsets = [0, 1], sizes = [16, 1], strides = [1, 1]} : vector<16x2xf32> to vector<16x1xf32>
    %8 = vector.extract_strided_slice %1 {offsets = [1, 0], sizes = [1, 16], strides = [1, 1]} : vector<2x16xf32> to vector<1x16xf32>
    %9 = vector.broadcast %7 : vector<16x1xf32> to vector<16x16xf32>
    %10 = vector.broadcast %8 : vector<1x16xf32> to vector<16x16xf32>
    %11 = arith.mulf %9, %10 : vector<16x16xf32>
    %12 = arith.addf %6, %11 : vector<16x16xf32>
    %c0_3 = arith.constant 0 : index
    %c0_4 = arith.constant 0 : index
    %13 = vector.load %arg3[%c0_3, %c0_4] : memref<1x16xf32, #tpu.memory_space<vmem>>, vector<1x16xf32>
    %14 = vector.broadcast %13 : vector<1x16xf32> to vector<16x16xf32>
    %15 = arith.addf %12, %14 : vector<16x16xf32>
    %16 = math.sin %15 : vector<16x16xf32>
    %17 = math.cos %15 : vector<16x16xf32>
    %18 = tpu.concatenate %16, %17 in 1 : vector<16x16xf32>, vector<16x16xf32> -> vector<16x32xf32>
    %c0_5 = arith.constant 0 : index
    %c0_6 = arith.constant 0 : index
    %19 = vector.load %arg1[%c0_5, %c0_6] : memref<16x5xf32, #tpu.memory_space<vmem>>, vector<16x5xf32>
    %20 = vector.extract_strided_slice %19 {offsets = [0, 0], sizes = [16, 1], strides = [1, 1]} : vector<16x5xf32> to vector<16x1xf32>
    %cst = arith.constant 1.000000e+00 : f32
    %21 = vector.broadcast %cst : f32 to vector<16x1xf32>
    %22 = arith.subf %21, %20 : vector<16x1xf32>
    %c0_7 = arith.constant 0 : index
    %c0_8 = arith.constant 0 : index
    %23 = vector.load %arg4[%c0_7, %c0_8] : memref<5x32xf32, #tpu.memory_space<vmem>>, vector<5x32xf32>
    %24 = vector.broadcast %22 : vector<16x1xf32> to vector<16x32xf32>
    %25 = arith.mulf %18, %24 : vector<16x32xf32>
    %26 = vector.extract_strided_slice %19 {offsets = [0, 0], sizes = [16, 1], strides = [1, 1]} : vector<16x5xf32> to vector<16x1xf32>
    %27 = vector.extract_strided_slice %23 {offsets = [0, 0], sizes = [1, 32], strides = [1, 1]} : vector<5x32xf32> to vector<1x32xf32>
    %28 = vector.broadcast %26 : vector<16x1xf32> to vector<16x32xf32>
    %29 = vector.broadcast %27 : vector<1x32xf32> to vector<16x32xf32>
    %30 = arith.mulf %28, %29 : vector<16x32xf32>
    %31 = arith.addf %25, %30 : vector<16x32xf32>
    %32 = vector.extract_strided_slice %19 {offsets = [0, 1], sizes = [16, 1], strides = [1, 1]} : vector<16x5xf32> to vector<16x1xf32>
    %33 = vector.extract_strided_slice %23 {offsets = [1, 0], sizes = [1, 32], strides = [1, 1]} : vector<5x32xf32> to vector<1x32xf32>
    %34 = vector.broadcast %32 : vector<16x1xf32> to vector<16x32xf32>
    %35 = vector.broadcast %33 : vector<1x32xf32> to vector<16x32xf32>
    %36 = arith.mulf %34, %35 : vector<16x32xf32>
    %37 = arith.addf %31, %36 : vector<16x32xf32>
    %38 = vector.extract_strided_slice %19 {offsets = [0, 2], sizes = [16, 1], strides = [1, 1]} : vector<16x5xf32> to vector<16x1xf32>
    %39 = vector.extract_strided_slice %23 {offsets = [2, 0], sizes = [1, 32], strides = [1, 1]} : vector<5x32xf32> to vector<1x32xf32>
    %40 = vector.broadcast %38 : vector<16x1xf32> to vector<16x32xf32>
    %41 = vector.broadcast %39 : vector<1x32xf32> to vector<16x32xf32>
    %42 = arith.mulf %40, %41 : vector<16x32xf32>
    %43 = arith.addf %37, %42 : vector<16x32xf32>
    %44 = vector.extract_strided_slice %19 {offsets = [0, 3], sizes = [16, 1], strides = [1, 1]} : vector<16x5xf32> to vector<16x1xf32>
    %45 = vector.extract_strided_slice %23 {offsets = [3, 0], sizes = [1, 32], strides = [1, 1]} : vector<5x32xf32> to vector<1x32xf32>
    %46 = vector.broadcast %44 : vector<16x1xf32> to vector<16x32xf32>
    %47 = vector.broadcast %45 : vector<1x32xf32> to vector<16x32xf32>
    %48 = arith.mulf %46, %47 : vector<16x32xf32>
    %49 = arith.addf %43, %48 : vector<16x32xf32>
    %50 = vector.extract_strided_slice %19 {offsets = [0, 4], sizes = [16, 1], strides = [1, 1]} : vector<16x5xf32> to vector<16x1xf32>
    %51 = vector.extract_strided_slice %23 {offsets = [4, 0], sizes = [1, 32], strides = [1, 1]} : vector<5x32xf32> to vector<1x32xf32>
    %52 = vector.broadcast %50 : vector<16x1xf32> to vector<16x32xf32>
    %53 = vector.broadcast %51 : vector<1x32xf32> to vector<16x32xf32>
    %54 = arith.mulf %52, %53 : vector<16x32xf32>
    %55 = arith.addf %49, %54 : vector<16x32xf32>
    %c0_9 = arith.constant 0 : index
    %c0_10 = arith.constant 0 : index
    %56 = vector.load %arg5[%c0_9, %c0_10] : memref<16x32xf32, #tpu.memory_space<vmem>>, vector<16x32xf32>
    tpu.vector_store %arg5[%c0_9, %c0_10], %55 {strides = array<i32>} : memref<16x32xf32, #tpu.memory_space<vmem>>, vector<16x32xf32>,
    return
  }
}

</mosaic_0001>

<bundles_post_ra>
// kernel: tpu_custom_call.1
= control target key start
LH: loop header
LB: loop body
LE: loop exit
PB: predicated region body
PF: predicated region fallthrough
CT: control target
= control target key end

     0   :  { %v856_v1 = vmov 1   ;;  %v857_v2 = vmov 0   ;;  %s1102_s0 = inlined_call_operand.vmem [shape: f32[16,2], index: 0, kind: input, shape index: {}]   ;;  %s1103_s1 = inlined_call_operand.vmem [shape: f32[16,5], index: 1, kind: input, shape index: {}]   ;;  %s1104_s2 = inlined_call_operand.vmem [shape: f32[2,16], index: 2, kind: input, shape index: {}]   ;;  %s1105_s3 = inlined_call_operand.vmem [shape: f32[1,16], index: 3, kind: input, shape index: {}]   ;;  %s1106_s4 = inlined_call_operand.vmem [shape: f32[5,32], index: 4, kind: input, shape index: {}]   ;;  %s1107_s5 = inlined_call_operand.hbm [shape: f32[16,32], index: 5, kind: output, shape index: {}]  }
   0x1   :  { %v21_v0 = vld [vmem:[%s1102_s0] sm:$0xff]  ;;  %818 = vset.pattern.permute.xlu1 %v856_v1  ;;  %817 = vset.pattern.permute.xlu0 %v857_v2 }
   0x2   :  { %38 = vperm.xlu1 %818, %v21_v0   ;;  %26 = vperm.xlu0 %817, %v21_v0  }
   0x3   :  { %10 = vsyncpa [#allocation3], 0  ;;  %v908_v3 = vld [vmem:[%s1103_s1] sm:$0xff]  ;;  %820 = vset.pattern.permute.xlu2 %v857_v2  ;;  %v22_v4 = vld [vmem:[%s1102_s0 + $0x8] sm:$0xff]  ;;  %v858_v9 = vmov 2   ;;  %v859_v10 = vmov 3  }
   0x4   :  { %704 = vperm.xlu2 %820, %v908_v3   ;;  %v918_v5 = vld [vmem:[%s1103_s1 + $0x8] sm:$0xff]  ;;  %v687_v6 = vsub.f32 1.0, %v908_v3  ;;  %v23_v7 = vld [vmem:[%s1104_s2] sm:$0x3]  ;;  %v860_v20 = vmov 4   ;;  %s867_s2 = smov 16  }
   0x5   :  { %v688_v8 = vsub.f32 1.0, %v918_v5  ;;  %v45_v11 = vperm.slane %v23_v7, 1  ;;  %v34_v12 = vperm.slane %v23_v7, 0  ;;  %v829_v16 = vld [vmem:[%s1105_s3] ss:$0 sm:$0xff]  ;;  %s778_s7 = sshll.u32 %s1107_s5, 4  ;;  %s779_s7 = int_to_ptr.hbm [resolvable:$true] %s778_s7 }
   0x6   :  { %v861_v42 = vmov 683565275   ;;  %v862_v44 = vmov 2475754826   ;;  %v863_v46 = vmov 2131351028  }
   0x7   :  { %v864_v51 = vmov 2102212464   ;;  %v865_v54 = vmov 920167782   ;;  %v866_v57 = vmov 1326507024  }
   0x8   :  { %s869_s8 = smov 128   ;;  %s870_s9 = smov 8  }
   0xa   :  { %42 = vperm.xlu1 %818, %v22_v4   ;;  %31 = vperm.xlu0 %817, %v22_v4  }
   0xc   :  { %822 = vset.pattern.permute.xlu2 %v856_v1 }
   0xd   :  { %722 = vperm.xlu2 %822, %v918_v5  }
  0x12   :  { %692 = vperm.xlu0 %817, %v687_v6   ;;  %819 = vset.pattern.permute.xlu1 %v857_v2 }
  0x13   :  { %697 = vperm.xlu1 %819, %v688_v8  }
  0x15   :  { %825 = vset.pattern.permute.xlu2 %v859_v10 }
  0x1a   :  { %709 = vperm.xlu0 %817, %v918_v5  }
  0x1b   :  { %821 = vset.pattern.permute.xlu1 %v856_v1 }
  0x1c   :  { %718 = vperm.xlu1 %821, %v908_v3  }
  0x22   :  { %823 = vset.pattern.permute.xlu0 %v858_v9 }
  0x23   :  { %731 = vperm.xlu0 %823, %v908_v3  }
  0x24   :  { %824 = vset.pattern.permute.xlu1 %v858_v9 }
  0x25   :  { %735 = vperm.xlu1 %824, %v918_v5  }
  0x2b   :  { %828 = vset.pattern.permute.xlu0 %v860_v20 }
  0x2c   :  { %761 = vperm.xlu0 %828, %v918_v5  }
  0x2d   :  { %826 = vset.pattern.permute.xlu1 %v859_v10 }
  0x2e   :  { %748 = vperm.xlu1 %826, %v918_v5  }
  0x74   :  { %v39_v13 = vpop.permute.xlu1 %38  ;;  %v27_v14 = vpop.permute.xlu0 %26 }
  0x75   :  { %v46_v15 = vmul.f32 %v45_v11, %v39_v13  ;;  %v35_v17 = vmul.f32 %v34_v12, %v27_v14 }
  0x77   :  { %v48_v18 = vadd.f32 %v46_v15, %v35_v17 }
  0x79   :  { %v932_v19 = vadd.f32 %v829_v16, %v48_v18 }
  0x7b   :  { %v59_v21 = vand.u32 2139095040, %v932_v19  ;;  %v56_v22 = vand.u32 2147483647, %v932_v19 }
  0x7c   :  { %v43_v23 = vpop.permute.xlu1 %42  ;;  %v32_v24 = vpop.permute.xlu0 %31 }
  0x7d   :  { %v60_v25 = vshrl.u32 %v59_v21, 23  ;;  %v47_v26 = vmul.f32 %v45_v11, %v43_v23  ;;  %v36_v27 = vmul.f32 %v34_v12, %v32_v24  ;;  %v63_v30 = vand.u32 8388607, %v56_v22 }
  0x7f   :  { %v790_v28 = vadd.s32 4294967169, %v60_v25  ;;  %v49_v29 = vadd.f32 %v47_v26, %v36_v27  ;;  %v64_v34 = vor.u32 8388608, %v63_v30 }
  0x81   :  { %v66_v31 = vadd.s32 1, %v790_v28  ;;  %v941_v32 = vadd.f32 %v829_v16, %v49_v29  ;;  %v945_v40 = vshll.u32 %v64_v34, 8 }
  0x83   :  { %vm67_vm0 = vcmp.gt.s32.totalorder %v66_v31, 0  ;;  %v214_v33 = vand.u32 2139095040, %v941_v32  ;;  %v211_v61 = vand.u32 2147483647, %v941_v32  ;;  %v105_v15 = vand.u32 65535, %v945_v40 }
  0x84   :  { %v68_v35 = vsel %vm67_vm0, %v66_v31, 0  ;;  %v106_v24 = vshrl.u32 %v945_v40, 16 }
  0x85   :  { %v70_v36 = vand.u32 31, %v68_v35  ;;  %v215_v37 = vshrl.u32 %v214_v33, 23  ;;  %v69_v41 = vshrl.u32 %v68_v35, 5  ;;  %v971_v25 = vand.u32 8388607, %v211_v61 }
  0x87   :  { %v71_v38 = vsub.s32 32, %v70_v36  ;;  %v793_v39 = vadd.s32 4294967169, %v215_v37  ;;  %v73_v43 = vshll.u32 %v861_v42, %v70_v36  ;;  %v76_v45 = vshll.u32 %v862_v44, %v70_v36 }
  0x88   :  { %v79_v47 = vshll.u32 %v863_v46, %v70_v36  ;;  %v82_v52 = vshll.u32 %v864_v51, %v70_v36  ;;  %v85_v56 = vshll.u32 %v865_v54, %v70_v36  ;;  %vm88_vm2 = vcmp.lt.s32.totalorder %v69_v41, 1 }
  0x89   :  { %v221_v48 = vadd.s32 1, %v793_v39  ;;  %v74_v49 = vshrl.u32 %v862_v44, %v71_v38  ;;  %v77_v50 = vshrl.u32 %v863_v46, %v71_v38  ;;  %v80_v53 = vshrl.u32 %v864_v51, %v71_v38 }
  0x8a   :  { %v83_v55 = vshrl.u32 %v865_v54, %v71_v38  ;;  %v86_v58 = vshrl.u32 %v866_v57, %v71_v38  ;;  %v72_v6 = vshrl.u32 %v861_v42, %v71_v38  ;;  %vm91_vm3 = vcmp.lt.s32.totalorder %v69_v41, 4 }
  0x8b   :  { %vm222_vm1 = vcmp.gt.s32.totalorder %v221_v48, 0  ;;  %v75_v59 = vor.u32 %v74_v49, %v73_v43  ;;  %v78_v60 = vor.u32 %v77_v50, %v76_v45  ;;  %v81_v63 = vor.u32 %v80_v53, %v79_v47 }
  0x8c   :  { %v223_v62 = vsel %vm222_vm1, %v221_v48, 0  ;;  %v84_v0 = vor.u32 %v83_v55, %v82_v52  ;;  %v87_v1 = vor.u32 %v86_v58, %v85_v56  ;;  %vm90_vm4 = vcmp.lt.s32.totalorder %v69_v41, 3 }
  0x8d   :  { %v959_v4 = vand.u32 31, %v223_v62  ;;  %v93_v7 = vsel %vm91_vm3, %v81_v63, 2102212464  ;;  %v96_v8 = vsel %vm88_vm2, %v75_v59, %v78_v60  ;;  %vm89_vm5 = vcmp.lt.s32.totalorder %v69_v41, 2 }
  0x8e   :  { %v97_v9 = vsel %vm91_vm3, %v84_v0, 920167782  ;;  %v100_v12 = vsel %vm88_vm2, %v78_v60, %v81_v63  ;;  %v92_v5 = vsel %vm88_vm2, %v72_v6, %v75_v59  ;;  %v101_v14 = vsel %vm91_vm3, %v87_v1, 1326507024 }
  0x8f   :  { %v963_v10 = vsub.s32 32, %v959_v4  ;;  %v98_v11 = vsel %vm90_vm4, %v81_v63, %v97_v9  ;;  %v94_v16 = vsel %vm90_vm4, %v78_v60, %v93_v7  ;;  %v102_v17 = vsel %vm90_vm4, %v84_v0, %v101_v14 }
  0x90   :  { %v99_v13 = vsel %vm89_vm5, %v96_v8, %v98_v11  ;;  %v103_v23 = vsel %vm89_vm5, %v100_v12, %v102_v17  ;;  %v228_v30 = vshll.u32 %v861_v42, %v959_v4  ;;  %v977_v31 = vshrl.u32 %v223_v62, 5 }
  0x91   :  { %v129_v18 = vand.u32 65535, %v99_v13  ;;  %v130_v21 = vshrl.u32 %v99_v13, 16  ;;  %v229_v26 = vshrl.u32 %v862_v44, %v963_v10  ;;  %v107_v27 = vand.u32 65535, %v103_v23 }
  0x92   :  { %v108_v28 = vshrl.u32 %v103_v23, 16  ;;  %v980_v33 = vsel %vm89_vm5, %v92_v5, %v94_v16  ;;  %v231_v48 = vshll.u32 %v862_v44, %v959_v4  ;;  %v232_v56 = vshrl.u32 %v863_v46, %v963_v10 }
  0x93   :  { %v132_v29 = vmul.u32 %v130_v21, %v105_v15  ;;  %v131_v34 = vmul.u32 %v129_v18, %v105_v15  ;;  %v133_v35 = vmul.u32 %v129_v18, %v106_v24  ;;  %v111_v37 = vmul.u32 %v107_v27, %v106_v24 }
  0x94   :  { %v110_v36 = vmul.u32 %v108_v28, %v105_v15  ;;  %v134_v38 = vmul.u32 %v130_v21, %v106_v24  ;;  %v982_v39 = vor.u32 %v229_v26, %v228_v30  ;;  %v109_v43 = vmul.u32 %v107_v27, %v105_v15 }
  0x95   :  { %v112_v45 = vmul.u32 %v108_v28, %v106_v24  ;;  %v135_v47 = vshll.u32 %v132_v29, 16  ;;  %v136_v52 = vshrl.u32 %v132_v29, 16  ;;  %v137_v53 = vshll.u32 %v133_v35, 16 }
  0x96   :  { %v113_v49 = vshll.u32 %v110_v36, 16  ;;  %v114_v50 = vshrl.u32 %v110_v36, 16  ;;  %v115_v41 = vshll.u32 %v111_v37, 16  ;;  %v235_v60 = vshrl.u32 %v864_v51, %v963_v10 }
  0x97   :  { %vm139_vm6 = vc.u32 %v131_v34, %v135_v47  ;;  %v141_v55 = vadd.s32 %v135_v47, %v131_v34  ;;  %v234_v63 = vshll.u32 %v863_v46, %v959_v4  ;;  %v995_v6 = vor.u32 %v232_v56, %v231_v48 }
  0x98   :  { %vm117_vm7 = vc.u32 %v109_v43, %v113_v49  ;;  %v119_v58 = vadd.s32 %v113_v49, %v109_v43  ;;  %v140_v59 = vsel %vm139_vm6, 1, %v857_v2  ;;  %v237_v11 = vshll.u32 %v864_v51, %v959_v4 }
  0x99   :  { %v118_v62 = vsel %vm117_vm7, 1, %v857_v2  ;;  %v142_v44 = vadd.s32 %v140_v59, %v134_v38  ;;  %vm143_vm8 = vc.u32 %v141_v55, %v137_v53  ;;  %v998_v9 = vor.u32 %v235_v60, %v234_v63 }
  0x9a   :  { %v120_v0 = vadd.s32 %v118_v62, %v112_v45  ;;  %vm121_vm9 = vc.u32 %v119_v58, %v115_v41  ;;  %v144_v1 = vsel %vm143_vm8, 1, %v857_v2  ;;  %v238_v5 = vshrl.u32 %v865_v54, %v963_v10 }
  0x9b   :  { %v122_v7 = vsel %vm121_vm9, 1, %v857_v2  ;;  %v146_v8 = vadd.s32 %v144_v1, %v142_v44  ;;  %v240_v46 = vshll.u32 %v865_v54, %v959_v4  ;;  %v241_v13 = vshrl.u32 %v866_v57, %v963_v10 }
  0x9c   :  { %v124_v12 = vadd.s32 %v122_v7, %v120_v0  ;;  %v116_v14 = vshrl.u32 %v111_v37, 16  ;;  %v138_v15 = vshrl.u32 %v133_v35, 16  ;;  %v219_v17 = vor.u32 8388608, %v971_v25 }
  0x9d   :  { %v147_v16 = vadd.s32 %v146_v8, %v136_v52  ;;  %v239_v21 = vor.u32 %v238_v5, %v237_v11  ;;  %v242_v23 = vor.u32 %v241_v13, %v240_v46  ;;  %vm243_vm10 = vcmp.lt.s32.totalorder %v977_v31, 1 }
  0x9e   :  { %v125_v18 = vadd.s32 %v124_v12, %v114_v50  ;;  %v1010_v51 = vadd.s32 %v141_v55, %v137_v53  ;;  %vm246_vm11 = vcmp.lt.s32.totalorder %v977_v31, 4  ;;  %v251_v54 = vsel %vm243_vm10, %v982_v39, %v995_v6 }
  0x9f   :  { %v148_v24 = vadd.s32 %v147_v16, %v138_v15  ;;  %vm245_vm12 = vcmp.lt.s32.totalorder %v977_v31, 3  ;;  %v252_v4 = vsel %vm246_vm11, %v239_v21, 920167782  ;;  %v255_v25 = vsel %vm243_vm10, %v995_v6, %v998_v9 }
  0xa0   :  { %v1017_v57 = vadd.s32 %v125_v18, %v116_v14  ;;  %vm244_vm13 = vcmp.lt.s32.totalorder %v977_v31, 2  ;;  %v253_v27 = vsel %vm245_vm12, %v998_v9, %v252_v4  ;;  %v256_v28 = vsel %vm246_vm11, %v242_v23, 1326507024 }
  0xa1   :  { %v152_v26 = vadd.s32 1, %v148_v24  ;;  %v149_v29 = vmul.u32 %v945_v40, %v980_v33  ;;  %v254_v30 = vsel %vm244_vm13, %v251_v54, %v253_v27  ;;  %v257_v34 = vsel %vm245_vm12, %v239_v21, %v256_v28 }
  0xa2   :  { %vm151_vm14 = vc.u32 %v1017_v57, %v1010_v51  ;;  %v258_v36 = vsel %vm244_vm13, %v255_v25, %v257_v34  ;;  %v1042_v37 = vshll.u32 %v219_v17, 8  ;;  %v285_v47 = vshrl.u32 %v254_v30, 16 }
  0xa3   :  { %v153_v35 = vsel %vm151_vm14, %v152_v26, %v148_v24  ;;  %v262_v43 = vand.u32 65535, %v258_v36  ;;  %v263_v45 = vshrl.u32 %v258_v36, 16  ;;  %v284_v52 = vand.u32 65535, %v254_v30 }
  0xa4   :  { %v154_v38 = vadd.s32 %v153_v35, %v149_v29  ;;  %v260_v40 = vand.u32 65535, %v1042_v37  ;;  %v261_v33 = vshrl.u32 %v1042_v37, 16  ;;  %v227_v23 = vshrl.u32 %v861_v42, %v963_v10 }
  0xa5   :  { %v248_v24 = vsel %vm246_vm11, %v998_v9, 2102212464  ;;  %v150_v35 = vadd.s32 %v1010_v51, %v1017_v57  ;;  %vm58_vm6 = vcmp.lt.s32.totalorder %v932_v19, 0  ;;  %vm57_vm7 = vcmp.le.f32.partialorder %v56_v22, 0.7853982 }
  0xa6   :  { %v155_v48 = vadd.s32 536870912, %v154_v38  ;;  %v265_v49 = vmul.u32 %v263_v45, %v260_v40  ;;  %v266_v50 = vmul.u32 %v262_v43, %v261_v33  ;;  %v287_v41 = vmul.u32 %v285_v47, %v260_v40 }
  0xa7   :  { %v264_v55 = vmul.u32 %v262_v43, %v260_v40  ;;  %v267_v59 = vmul.u32 %v263_v45, %v261_v33  ;;  %v286_v63 = vmul.u32 %v284_v52, %v260_v40  ;;  %v288_v7 = vmul.u32 %v284_v52, %v261_v33 }
  0xa8   :  { %v1046_v53 = vshrl.u32 %v155_v48, 30  ;;  %v268_v56 = vshll.u32 %v265_v49, 16  ;;  %v290_v60 = vshll.u32 %v287_v41, 16  ;;  %v270_v62 = vshll.u32 %v266_v50, 16 }
  0xa9   :  { %v289_v5 = vmul.u32 %v285_v47, %v261_v33  ;;  %v292_v15 = vshll.u32 %v288_v7, 16  ;;  %v269_v17 = vshrl.u32 %v265_v49, 16  ;;  %v271_v4 = vshrl.u32 %v266_v50, 16 }
  0xaa   :  { %v157_v58 = vshll.u32 %v1046_v53, 30  ;;  %vm272_vm15 = vc.u32 %v264_v55, %v268_v56  ;;  %v274_v44 = vadd.s32 %v268_v56, %v264_v55  ;;  %vm294_vm1 = vc.u32 %v286_v63, %v290_v60 }
  0xab   :  { %v273_v1 = vsel %vm272_vm15, 1, %v857_v2  ;;  %v295_v46 = vsel %vm294_vm1, 1, %v857_v2  ;;  %v296_v13 = vadd.s32 %v290_v60, %v286_v63  ;;  %v291_v27 = vshrl.u32 %v287_v41, 16 }
  0xac   :  { %v158_v0 = vsub.s32 %v154_v38, %v157_v58  ;;  %v275_v8 = vadd.s32 %v273_v1, %v267_v59  ;;  %vm276_vm0 = vc.u32 %v274_v44, %v270_v62  ;;  %v297_v21 = vadd.s32 %v295_v46, %v289_v5 }
  0xad   :  { %v277_v12 = vsel %vm276_vm0, 1, %v857_v2  ;;  %vm298_vm3 = vc.u32 %v296_v13, %v292_v15  ;;  %v247_v29 = vsel %vm243_vm10, %v227_v23, %v982_v39  ;;  %v249_v42 = vsel %vm245_vm12, %v995_v6, %v248_v24 }
  0xae   :  { %vm159_vm2 = vcmp.lt.s32.totalorder %v158_v0, 0  ;;  %v160_v11 = vsub.s32 0, %v158_v0  ;;  %v279_v18 = vadd.s32 %v277_v12, %v275_v8  ;;  %v299_v26 = vsel %vm298_vm3, 1, %v857_v2 }
  0xaf   :  { %v301_v28 = vadd.s32 %v299_v26, %v297_v21  ;;  %v293_v9 = vshrl.u32 %v288_v7, 16  ;;  %v300_v38 = vadd.s32 %v296_v13, %v292_v15  ;;  %v250_v43 = vsel %vm244_vm13, %v247_v29, %v249_v42 }
  0xb0   :  { %v161_v14 = vsel %vm159_vm2, %v160_v11, %v158_v0  ;;  %v280_v25 = vadd.s32 %v279_v18, %v269_v17  ;;  %v304_v49 = vmul.u32 %v1042_v37, %v250_v43  ;;  %v180_v60 = vsub.s32 4, %v1046_v53 }
  0xb1   :  { %v162_v16 = vclz %v161_v14  ;;  %v302_v34 = vadd.s32 %v301_v28, %v291_v27  ;;  %vm199_vm0 = vweird.f32 %v932_v19  ;;  %vm213_vm1 = vcmp.lt.s32.totalorder %v941_v32, 0 }
  0xb2   :  { %v281_v10 = vadd.s32 %v280_v25, %v271_v4  ;;  %v181_v1 = vsel %vm58_vm6, %v180_v60, %v1046_v53  ;;  %vm212_vm2 = vcmp.le.f32.partialorder %v211_v61, 0.7853982 }
  0xb3   :  { %v791_v54 = vadd.s32 4294967294, %v162_v16  ;;  %v303_v45 = vadd.s32 %v302_v34, %v293_v9  ;;  %v183_v5 = vsel %vm57_vm7, 0, %v181_v1 }
  0xb4   :  { %vm306_vm5 = vc.u32 %v281_v10, %v300_v38  ;;  %v200_v22 = vadd.s32 3, %v183_v5  ;;  %v305_v23 = vadd.s32 %v300_v38, %v281_v10 }
  0xb5   :  { %vm792_vm4 = vcmp.lt.s32.totalorder %v791_v54, 0  ;;  %v307_v33 = vadd.s32 1, %v303_v45 }
  0xb6   :  { %v165_v30 = vsel %vm792_vm4, 0, %v791_v54  ;;  %v201_v25 = vand.u32 3, %v200_v22 }
  0xb7   :  { %v166_v36 = vsub.s32 32, %v165_v30  ;;  %v170_v2 = vsub.s32 4294967266, %v165_v30  ;;  %v167_v47 = vshll.u32 %v158_v0, %v165_v30  ;;  %v308_v50 = vsel %vm306_vm5, %v307_v33, %v303_v45 }
  0xb8   :  { %v309_v41 = vadd.s32 %v308_v50, %v304_v49  ;;  %v510_v30 = vand.u32 3, %v183_v5  ;;  %vm206_vm10 = vcmp.eq.s32.totalorder %v201_v25, 2  ;;  %vm203_vm13 = vcmp.eq.s32.totalorder %v201_v25, 0 }
  0xb9   :  { %v168_v39 = vshrl.u32 %v150_v35, %v166_v36  ;;  %v171_v40 = vadd.s32 127, %v170_v2  ;;  %vm202_vm15 = vcmp.lt.s32.totalorder %v201_v25, 2 }
  0xba   :  { %v310_v55 = vadd.s32 536870912, %v309_v41  ;;  %vm511_vm11 = vcmp.lt.s32.totalorder %v510_v30, 2  ;;  %vm512_vm12 = vcmp.eq.s32.totalorder %v510_v30, 0  ;;  %vm515_vm14 = vcmp.eq.s32.totalorder %v510_v30, 2 }
  0xbb   :  { %v169_v6 = vor.u32 %v168_v39, %v167_v47  ;;  %v172_v48 = vshll.u32 %v171_v40, 23 }
  0xbc   :  { %v1069_v58 = vshrl.u32 %v310_v55, 30 }
  0xbd   :  { %v173_v52 = vor.u32 4788187, %v172_v48  ;;  %v176_v57 = vcvt.s32.f32 %v169_v6 }
  0xbe   :  { %v312_v59 = vshll.u32 %v1069_v58, 30 }
  0xbf   :  { %v174_v51 = vand.u32 2147483647, %v173_v52 }
  0xc0   :  { %v313_v62 = vsub.s32 %v309_v41, %v312_v59  ;;  %v335_v41 = vsub.s32 4, %v1069_v58 }
  0xc1   :  { %v177_v56 = vmul.f32 %v176_v57, %v174_v51 }
  0xc2   :  { %vm314_vm8 = vcmp.lt.s32.totalorder %v313_v62, 0  ;;  %v315_v0 = vsub.s32 0, %v313_v62  ;;  %v336_v55 = vsel %vm213_vm1, %v335_v41, %v1069_v58 }
  0xc3   :  { %v178_v31 = vxor.u32 2147483648, %v177_v56  ;;  %v338_v59 = vsel %vm212_vm2, 0, %v336_v55 }
  0xc4   :  { %v316_v11 = vsel %vm314_vm8, %v315_v0, %v313_v62  ;;  %v664_v5 = vand.u32 3, %v338_v59 }
  0xc5   :  { %v179_v37 = vsel %vm58_vm6, %v178_v31, %v177_v56  ;;  %v317_v12 = vclz %v316_v11 }
  0xc6   :  { %v182_v44 = vsel %vm57_vm7, %v932_v19, %v179_v37  ;;  %vm665_vm5 = vcmp.lt.s32.totalorder %v664_v5, 2  ;;  %vm666_vm6 = vcmp.eq.s32.totalorder %v664_v5, 0  ;;  %vm669_vm7 = vcmp.eq.s32.totalorder %v664_v5, 2 }
  0xc7   :  { %v184_v63 = vmul.f32 %v182_v44, %v182_v44  ;;  %v794_v14 = vadd.s32 4294967294, %v317_v12 }
  0xc9   :  { %v185_v7 = vmul.f32 -0.001358992, %v184_v63  ;;  %v192_v8 = vmul.f32 -0.00019511016, %v184_v63  ;;  %vm795_vm9 = vcmp.lt.s32.totalorder %v794_v14, 0 }
  0xca   :  { %v320_v21 = vsel %vm795_vm9, 0, %v794_v14  ;;  %vm354_vm9 = vweird.f32 %v941_v32 }
  0xcb   :  { %v186_v46 = vadd.f32 0.041655596, %v185_v7  ;;  %v193_v13 = vadd.f32 0.008332121, %v192_v8  ;;  %v321_v24 = vsub.s32 32, %v320_v21  ;;  %v325_v54 = vsub.s32 4294967266, %v320_v21 }
  0xcc   :  { %v322_v26 = vshll.u32 %v313_v62, %v320_v21 }
  0xcd   :  { %v187_v15 = vmul.f32 %v186_v46, %v184_v63  ;;  %v194_v16 = vmul.f32 %v193_v13, %v184_v63  ;;  %v323_v27 = vshrl.u32 %v305_v23, %v321_v24  ;;  %v326_v28 = vadd.s32 127, %v325_v54  ;;  %v705_v24 = vpop.permute.xlu2 %704  ;;  %v698_v54 = vpop.permute.xlu1 %697 }
  0xcf   :  { %v188_v17 = vadd.f32 -0.4999988, %v187_v15  ;;  %v195_v18 = vadd.f32 -0.16666654, %v194_v16  ;;  %v324_v9 = vor.u32 %v323_v27, %v322_v26  ;;  %v327_v34 = vshll.u32 %v326_v28, 23 }
  0xd0   :  { %v689_v28 = vld [vmem:[%s1106_s4] sm:$0x1f]  ;;  %s868_s4 = smov [#allocation2]  }
  0xd1   :  { %v189_v4 = vmul.f32 %v188_v17, %v184_v63  ;;  %v196_v53 = vmul.f32 %v195_v18, %v184_v63  ;;  %v328_v2 = vor.u32 4788187, %v327_v34  ;;  %v331_v45 = vcvt.s32.f32 %v324_v9  ;;  %s776_s29 = sshll.u32 %s868_s4, 4  ;;  %s777_s29 = int_to_ptr.vmem [resolvable:$true] %s776_s29 }
  0xd2   :  { %v355_v63 = vadd.s32 3, %v338_v59  ;;  %v725_v30 = vperm.slane %v689_v28, 1 }
  0xd3   :  { %v190_v29 = vadd.f32 1.0, %v189_v4  ;;  %v197_v42 = vadd.f32 1.0, %v196_v53  ;;  %v329_v38 = vand.u32 2147483647, %v328_v2  ;;  %v693_v4 = vpop.permute.xlu0 %692  ;;  %v751_v2 = vperm.slane %v689_v28, 3 }
  0xd4   :  { %v356_v11 = vand.u32 3, %v355_v63 }
  0xd5   :  { %v198_v35 = vmul.f32 %v197_v42, %v182_v44  ;;  %v207_v36 = vxor.u32 2147483648, %v190_v29  ;;  %v332_v48 = vmul.f32 %v331_v45, %v329_v38  ;;  %v723_v53 = vpop.permute.xlu2 %722  ;;  %v719_v25 = vpop.permute.xlu1 %718  ;;  %v712_v42 = vperm.slane %v689_v28, 0 }
  0xd6   :  { %vm361_vm3 = vcmp.eq.s32.totalorder %v356_v11, 2  ;;  %vm358_vm4 = vcmp.eq.s32.totalorder %v356_v11, 0  ;;  %vm357_vm8 = vcmp.lt.s32.totalorder %v356_v11, 2 }
  0xd7   :  { %v204_v43 = vxor.u32 2147483648, %v198_v35  ;;  %v208_v10 = vsel %vm206_vm10, %v207_v36, %v198_v35  ;;  %v517_v39 = vsel %vm515_vm14, %v207_v36, %v198_v35  ;;  %v333_v52 = vxor.u32 2147483648, %v332_v48 }
  0xd8   :  { %vm682_vm10 = vcmask 130048   ;;  %v738_v35 = vperm.slane %v689_v28, 2 }
  0xd9   :  { %v514_v47 = vsel %vm512_vm12, %v190_v29, %v204_v43  ;;  %v205_v40 = vsel %vm203_vm13, %v190_v29, %v204_v43  ;;  %v334_v51 = vsel %vm213_vm1, %v333_v52, %v332_v48  ;;  %v727_v43 = vmul.f32 %v725_v30, %v723_v53 }
  0xda   :  { %v518_v33 = vsel %vm511_vm11, %v514_v47, %v517_v39  ;;  %v209_v6 = vsel %vm202_vm15, %v205_v40, %v208_v10  ;;  %v337_v19 = vsel %vm212_vm2, %v941_v32, %v334_v51  ;;  %v764_v39 = vperm.slane %v689_v28, 4 }
  0xdb   :  { %v519_v49 = vsel %vm199_vm0, nan, %v518_v33  ;;  %v1079_v50 = vsel %vm199_vm0, nan, %v209_v6  ;;  %v339_v57 = vmul.f32 %v337_v19, %v337_v19  ;;  %v710_v26 = vpop.permute.xlu0 %709  ;;  %v713_v33 = vmul.f32 %v712_v42, %v705_v24 }
  0xdc   :  { %676 = vrot.lane.b32.xlu2 %v519_v49, %s867_s2  ;;  %v714_v34 = vmul.f32 %v712_v42, %v710_v26  ;;  %v726_v49 = vmul.f32 %v725_v30, %v719_v25  ;;  %vm769_vm11 = vcmask 261120  }
  0xdd   :  { %v340_v56 = vmul.f32 -0.001358992, %v339_v57  ;;  %v347_v31 = vmul.f32 -0.00019511016, %v339_v57  ;;  %v736_v32 = vpop.permute.xlu1 %735 }
  0xde   :  { %v740_v45 = vmul.f32 %v738_v35, %v736_v32 }
  0xdf   :  { %v341_v60 = vadd.f32 0.041655596, %v340_v56  ;;  %v348_v37 = vadd.f32 0.008332121, %v347_v31 }
  0xe1   :  { %v342_v62 = vmul.f32 %v341_v60, %v339_v57  ;;  %v349_v44 = vmul.f32 %v348_v37, %v339_v57 }
  0xe3   :  { %v343_v0 = vadd.f32 -0.4999988, %v342_v62  ;;  %v350_v1 = vadd.f32 -0.16666654, %v349_v44  ;;  %v732_v29 = vpop.permute.xlu0 %731 }
  0xe4   :  { %v739_v55 = vmul.f32 %v738_v35, %v732_v29 }
  0xe5   :  { %v344_v7 = vmul.f32 %v343_v0, %v339_v57  ;;  %v351_v8 = vmul.f32 %v350_v1, %v339_v57  ;;  %v749_v10 = vpop.permute.xlu1 %748 }
  0xe6   :  { %v753_v48 = vmul.f32 %v751_v2, %v749_v10 }
  0xe7   :  { %v345_v61 = vadd.f32 1.0, %v344_v7  ;;  %v352_v12 = vadd.f32 1.0, %v351_v8 }
  0xe9   :  { %v353_v46 = vmul.f32 %v352_v12, %v337_v19  ;;  %v362_v13 = vxor.u32 2147483648, %v345_v61 }
  0xeb   :  { %v359_v58 = vxor.u32 2147483648, %v353_v46  ;;  %v363_v14 = vsel %vm361_vm3, %v362_v13, %v353_v46  ;;  %v671_v16 = vsel %vm669_vm7, %v362_v13, %v353_v46  ;;  %v762_v40 = vpop.permute.xlu0 %761 }
  0xed   :  { %v668_v15 = vsel %vm666_vm6, %v345_v61, %v359_v58  ;;  %v360_v22 = vsel %vm358_vm4, %v345_v61, %v359_v58 }
  0xee   :  { %v672_v17 = vsel %vm665_vm5, %v668_v15, %v671_v16  ;;  %v364_v18 = vsel %vm357_vm8, %v360_v22, %v363_v14 }
  0xef   :  { %v673_v21 = vsel %vm354_vm9, nan, %v672_v17  ;;  %v365_v23 = vsel %vm354_vm9, nan, %v364_v18 }
  0xf0   :  { %678 = vrot.lane.b32.xlu2 %v673_v21, %s867_s2 }
  0xf8   :  { %744 = vperm.xlu2 %825, %v908_v3  }
 0x100   :  { %827 = vset.pattern.permute.xlu2 %v860_v20 }
 0x101   :  { %757 = vperm.xlu2 %827, %v908_v3  }
 0x136   :  { %v677_v27 = vpop.permute.xlu2 %676 }
 0x137   :  { %v683_v20 = vsel %vm682_vm10, %v1079_v50, %v677_v27  ;;  %v766_v50 = vmul.f32 %v764_v39, %v762_v40 }
 0x138   :  { %v700_v38 = vmul.f32 %v693_v4, %v683_v20 }
 0x13a   :  { %v715_v52 = vadd.f32 %v713_v33, %v700_v38 }
 0x13c   :  { %v728_v57 = vadd.f32 %v726_v49, %v715_v52 }
 0x13e   :  { %v741_v59 = vadd.f32 %v739_v55, %v728_v57 }
 0x14a   :  { %v679_v9 = vpop.permute.xlu2 %678 }
 0x14b   :  { %v684_v3 = vsel %vm682_vm10, %v365_v23, %v679_v9 }
 0x14c   :  { %v701_v36 = vmul.f32 %v698_v54, %v684_v3 }
 0x14e   :  { %v716_v47 = vadd.f32 %v714_v34, %v701_v36 }
 0x150   :  { %v729_v6 = vadd.f32 %v727_v43, %v716_v47 }
 0x152   :  { %v742_v41 = vadd.f32 %v740_v45, %v729_v6  ;;  %v745_v51 = vpop.permute.xlu2 %744 }
 0x153   :  { %v752_v31 = vmul.f32 %v751_v2, %v745_v51 }
 0x154   :  { %v755_v19 = vadd.f32 %v753_v48, %v742_v41 }
 0x155   :  { %v754_v37 = vadd.f32 %v752_v31, %v741_v59 }
 0x156   :  { %v768_v56 = vadd.f32 %v766_v50, %v755_v19 }
 0x158   :  { %771 = vst.msk [vmem:[#allocation2 + $0x8] sm:$0xff] %vm769_vm11, %v768_v56 }
 0x15b   :  { %v758_v60 = vpop.permute.xlu2 %757 }
 0x15c   :  { %v765_v62 = vmul.f32 %v764_v39, %v758_v60 }
 0x15e   :  { %v767_v44 = vadd.f32 %v765_v62, %v754_v37 }
 0x160   :  { %770 = vst.msk [vmem:[#allocation2] sm:$0xff] %vm769_vm11, %v767_v44 }
 0x161   :  { %784 = dma.vmem_to_hbm [thread:$0]  %s777_s29, 256, %s779_s7, [#allocation3], %s869_s8, %s869_s8, %s870_s9  }
 0x162   :  { %854 = dma.done.wait [#allocation3], 256  }
 0x163   :  { %855 = vsyncadd [#allocation3], 4294967040 }
 0x164   :  { %789 = vsyncpa [#allocation3], 1 }

</bundles_post_ra>
